<compile_context>
chip_gen: v7x
topology: tpu7x:2x2x1
jax: 0.10.0
libtpu: 0.0.40
codegen_flags: <defaults>
</compile_context>

<pallas_src>
import math
import functools

import jax
import jax.numpy as jnp
from jax.experimental import pallas as pl
from jax.experimental.pallas import tpu as pltpu


def mha_kernel(x_ref, bias_ref,
               wqkv_ref, bqkv_ref,      # merged, pre-transposed QKV weight / bias
               wo_ref, bo_ref,          # pre-transposed output projection
               gamma_ref, beta_ref,
               o_ref,
               att_ref,                 # VMEM scratch [S, D]: concat-head attention out
               *, num_head, dim_head, dim_model):
    D, dh = dim_model, dim_head

    x = x_ref[0]                                    # [S, D] f32
    bias = bias_ref[0]                              # [1, S] f32 (0 keep / -1e9 masked)
    x_bf = x.astype(jnp.bfloat16)

    # ---- (1) merged QKV projection: ONE MXU-saturating matmul, no x copies --
    # wqkv_ref: [D, 3D] bf16, columns = [Q heads | K heads | V heads];
    # Q columns (and bias) pre-scaled by 1/sqrt(dh) on the host.
    qkv = jnp.dot(x_bf, wqkv_ref[...],
                  preferred_element_type=jnp.float32) + bqkv_ref[...]   # [S, 3D] f32

    # ---- (2) per-head attention (2-D matmuls; one [S,S] score block live) ---
    # NOTE: the h*dh lane slices are cheap here; for dh % 128 != 0 at large
    # scale, pad each head slab to 128 lanes on the host to make them aligned.
    for h in range(num_head):
        q_h = qkv[:, 0 * D + h * dh: 0 * D + (h + 1) * dh].astype(jnp.bfloat16)
        k_h = qkv[:, 1 * D + h * dh: 1 * D + (h + 1) * dh].astype(jnp.bfloat16)
        v_h = qkv[:, 2 * D + h * dh: 2 * D + (h + 1) * dh].astype(jnp.bfloat16)

        # scores = (q @ k^T) (scale pre-folded into Wq) + additive mask bias
        s_h = jax.lax.dot_general(q_h, k_h, (((1,), (1,)), ((), ())),
                                  preferred_element_type=jnp.float32) + bias  # [S, S]

        # numerically-stable softmax in f32; EUP reciprocal for normalization
        s_h = s_h - jnp.max(s_h, axis=-1, keepdims=True)
        p_h = jnp.exp(s_h)
        p_h = p_h * pl.reciprocal(jnp.sum(p_h, axis=-1, keepdims=True), approx=True)

        # attention output for this head, written straight into the
        # concat-head lane layout (static-slice VMEM store, no concatenate op)
        att_ref[:, h * dh:(h + 1) * dh] = jnp.dot(
            p_h.astype(jnp.bfloat16), v_h, preferred_element_type=jnp.float32)

    # ---- (3) merged output projection: head merge folded into ONE matmul ----
    # att is already "concat(heads)"; wo_ref = Wo.T [D, D], so the head sum
    # happens inside the K=D MXU contraction (no [H,S,D] f32 intermediate).
    att = att_ref[...].astype(jnp.bfloat16)                              # [S, D]
    out = jnp.dot(att, wo_ref[...],
                  preferred_element_type=jnp.float32) + bo_ref[...]      # [S, D] f32

    # ---- (4) residual + LayerNorm (f32) -------------------------------------
    res = x + out
    mean = jnp.mean(res, axis=-1, keepdims=True)
    var = jnp.mean((res - mean) ** 2, axis=-1, keepdims=True)
    normed = (res - mean) * jax.lax.rsqrt(var + 1e-5)
    o_ref[0] = (normed * gamma_ref[...] + beta_ref[...]).astype(o_ref.dtype)


def _pick_vmem_limit():
    """~96 MiB on v5e/v6e (128 MiB physical), ~48 MiB on v7x (64 MiB physical)."""
    try:
        phys = pltpu.get_tpu_info().vmem_capacity_bytes
        return int(min(phys * 3 // 4, 96 * 1024 * 1024))
    except Exception:  # conservative fallback, safe on all generations
        return 48 * 1024 * 1024


def multi_head_attention(x, mask, params, num_head):
    """x: [B, S, D] f32; mask: [B, S] (1=keep, 0=mask) or None.

    params = (wq, bq, wk, bk, wv, bv, wo, bo, gamma, beta) in PyTorch layout:
      w*: [D_out, D_in], b*: [D], gamma/beta: [D].
    """
    wq, bq, wk, bk, wv, bv, wo, bo, gamma, beta = params
    B, S, D = x.shape
    assert D % num_head == 0
    dh = D // num_head
    scale = jnp.float32(1.0 / math.sqrt(dh))

    # ---------- host-side (free, once) parameter re-packing -----------------
    # Fold 1/sqrt(dh) into Q, pre-transpose to [D_in, D_out], fuse Q/K/V along
    # the output-column dim, cast MXU operands to bf16.
    wqkv = jnp.concatenate([(wq * scale).T, wk.T, wv.T],
                           axis=1).astype(jnp.bfloat16)                  # [D, 3D]
    bqkv = jnp.concatenate([bq * scale, bk, bv]).reshape(1, 3 * D).astype(jnp.float32)
    wo_t = wo.T.astype(jnp.bfloat16)                                     # [D, D]
    bo2 = bo.reshape(1, D).astype(jnp.float32)
    gamma2 = gamma.reshape(1, D).astype(jnp.float32)
    beta2 = beta.reshape(1, D).astype(jnp.float32)

    if mask is None:
        mask = jnp.ones((B, S), dtype=jnp.float32)
    # Additive bias: 0 where kept, -1e9 where masked (one add in-kernel).
    bias = ((mask.astype(jnp.float32) - 1.0) * 1e9).reshape(B, 1, S)

    kernel = functools.partial(mha_kernel, num_head=num_head,
                               dim_head=dh, dim_model=D)

    def resident(shape):
        # Constant index_map -> block stays resident in VMEM across the grid.
        return pl.BlockSpec(shape, lambda b: tuple(0 for _ in shape))

    return pl.pallas_call(
        kernel,
        out_shape=jax.ShapeDtypeStruct((B, S, D), jnp.float32),
        grid=(B,),
        in_specs=[
            pl.BlockSpec((1, S, D), lambda b: (b, 0, 0)),   # x
            pl.BlockSpec((1, 1, S), lambda b: (b, 0, 0)),   # additive mask bias
            resident((D, 3 * D)),                           # merged QKV weight (bf16)
            resident((1, 3 * D)),                           # merged QKV bias   (f32)
            resident((D, D)),                               # Wo.T              (bf16)
            resident((1, D)),                               # bo
            resident((1, D)), resident((1, D)),             # gamma, beta
        ],
        out_specs=pl.BlockSpec((1, S, D), lambda b: (b, 0, 0)),
        scratch_shapes=[pltpu.VMEM((S, D), jnp.float32)],   # concat-head att buffer
        compiler_params=pltpu.CompilerParams(
            # Batch axis parallel -> megacore / both v7x TensorCores.
            dimension_semantics=("parallel",),
            vmem_limit_bytes=_pick_vmem_limit(),
        ),
    )(x, bias, wqkv, bqkv, wo_t, bo2, gamma2, beta2)


def reference_mha(x, mask, params, num_head):
    """Pure-JAX f32 reference mirroring the PyTorch forward (eval mode)."""
    wq, bq, wk, bk, wv, bv, wo, bo, gamma, beta = params
    B, S, D = x.shape
    dh = D // num_head

    def split_heads(t):  # [B,S,D] -> [B,H,S,dh]
        return t.reshape(B, S, num_head, dh).transpose(0, 2, 1, 3)

    q = split_heads(x @ wq.T + bq)
    k = split_heads(x @ wk.T + bk)
    v = split_heads(x @ wv.T + bv)
    scores = jnp.einsum("bhqd,bhkd->bhqk", q, k) / math.sqrt(dh)
    if mask is not None:
        m = mask.reshape(B, 1, 1, S)
        scores = jnp.where(m == 0, -1e9, scores)
    p = jax.nn.softmax(scores, axis=-1)
    att = jnp.einsum("bhqk,bhkd->bhqd", p, v).transpose(0, 2, 1, 3).reshape(B, S, D)
    out = att @ wo.T + bo
    res = x + out
    mean = jnp.mean(res, axis=-1, keepdims=True)
    var = jnp.mean((res - mean) ** 2, axis=-1, keepdims=True)
    return (res - mean) / jnp.sqrt(var + 1e-5) * gamma + beta


if __name__ == "__main__":
    B, S, D, num_head = 2, 8, 32, 4

    key = jax.random.PRNGKey(0)
    keys = jax.random.split(key, 12)

    x = jax.random.normal(keys[0], (B, S, D), dtype=jnp.float32)

    # Deterministic parameter init (shapes from MultiHeadAttention.__init__).
    def lin_init(kw, kb, fan_in, fan_out):
        w = jax.random.normal(kw, (fan_out, fan_in), dtype=jnp.float32) * 0.05
        b = jax.random.normal(kb, (fan_out,), dtype=jnp.float32) * 0.05
        return w, b

    wq, bq = lin_init(keys[1], keys[2], D, D)
    wk, bk = lin_init(keys[3], keys[4], D, D)
    wv, bv = lin_init(keys[5], keys[6], D, D)
    wo, bo = lin_init(keys[7], keys[8], D, D)
    gamma = 1.0 + 0.1 * jax.random.normal(keys[9], (D,), dtype=jnp.float32)
    beta = 0.1 * jax.random.normal(keys[10], (D,), dtype=jnp.float32)
    params = (wq, bq, wk, bk, wv, bv, wo, bo, gamma, beta)

    # Padding-style mask: batch 0 fully valid, batch 1 masks last 2 positions.
    mask = jnp.ones((B, S), dtype=jnp.float32)
    mask = mask.at[1, S - 2:].set(0.0)

    out = multi_head_attention(x, mask, params, num_head)
    jax.block_until_ready(out)

    ref = reference_mha(x, mask, params, num_head)
    assert out.shape == (B, S, D)
    max_err = float(jnp.max(jnp.abs(out - ref)))
    # bf16 MXU operands + approx reciprocal => relax tolerance vs. the f32 ref.
    assert jnp.allclose(out, ref, atol=2e-2, rtol=2e-2), \
        f"mismatch vs reference (max abs err {max_err})"

    print("KERNEL_OK")
</pallas_src>

<mosaic_0001>
module attributes {stable_mosaic.version = 11 : i64} {
  func.func @mha_kernel(%arg0: i32, %arg1: memref<1x8x32xf32, #tpu.memory_space<vmem>>, %arg2: memref<1x1x8xf32, #tpu.memory_space<vmem>>, %arg3: memref<32x96xbf16, #tpu.memory_space<vmem>>, %arg4: memref<1x96xf32, #tpu.memory_space<vmem>>, %arg5: memref<32x32xbf16, #tpu.memory_space<vmem>>, %arg6: memref<1x32xf32, #tpu.memory_space<vmem>>, %arg7: memref<1x32xf32, #tpu.memory_space<vmem>>, %arg8: memref<1x32xf32, #tpu.memory_space<vmem>>, %arg9: memref<1x8x32xf32, #tpu.memory_space<vmem>>, %arg10: memref<8x32xf32, #tpu.memory_space<vmem>>) attributes {dimension_semantics = [#tpu.dimension_semantics<parallel>], iteration_bounds = array<i64: 2>, scalar_prefetch = 0 : i64, scratch_operands = 1 : i64, tpu.core_type = #tpu.core_type<tc>, window_params = [{transform_indices = @transform_0, window_bounds = array<i64: 1, 8, 32>}, {transform_indices = @transform_1, window_bounds = array<i64: 1, 1, 8>}, {pipeline_mode = #tpu.pipeline_mode<synchronous>, transform_indices = @transform_2, window_bounds = array<i64: 32, 96>}, {pipeline_mode = #tpu.pipeline_mode<synchronous>, transform_indices = @transform_3, window_bounds = array<i64: 1, 96>}, {pipeline_mode = #tpu.pipeline_mode<synchronous>, transform_indices = @transform_4, window_bounds = array<i64: 32, 32>}, {pipeline_mode = #tpu.pipeline_mode<synchronous>, transform_indices = @transform_5, window_bounds = array<i64: 1, 32>}, {pipeline_mode = #tpu.pipeline_mode<synchronous>, transform_indices = @transform_6, window_bounds = array<i64: 1, 32>}, {pipeline_mode = #tpu.pipeline_mode<synchronous>, transform_indices = @transform_7, window_bounds = array<i64: 1, 32>}, {transform_indices = @transform_8, window_bounds = array<i64: 1, 8, 32>}]} {
    %c0 = arith.constant 0 : index
    %c0_0 = arith.constant 0 : index
    %c0_1 = arith.constant 0 : index
    %0 = vector.load %arg1[%c0, %c0_0, %c0_1] : memref<1x8x32xf32, #tpu.memory_space<vmem>>, vector<1x8x32xf32>
    %1 = vector.shape_cast %0 : vector<1x8x32xf32> to vector<8x32xf32>
    %c0_2 = arith.constant 0 : index
    %c0_3 = arith.constant 0 : index
    %c0_4 = arith.constant 0 : index
    %2 = vector.load %arg2[%c0_2, %c0_3, %c0_4] : memref<1x1x8xf32, #tpu.memory_space<vmem>>, vector<1x1x8xf32>
    %3 = vector.shape_cast %2 : vector<1x1x8xf32> to vector<1x8xf32>
    %4 = arith.truncf %1 : vector<8x32xf32> to vector<8x32xbf16>
    %c0_5 = arith.constant 0 : index
    %c0_6 = arith.constant 0 : index
    %5 = vector.load %arg3[%c0_5, %c0_6] : memref<32x96xbf16, #tpu.memory_space<vmem>>, vector<32x96xbf16>
    %cst = arith.constant dense<0.000000e+00> : vector<8x96xf32>
    %6 = tpu.matmul %4, %5, %cst {dimension_numbers = #tpu.dot_dimension_numbers<[1], [0], [0], [1], [0, 0, 1, 1], [], []>} : vector<8x32xbf16>, vector<32x96xbf16>, vector<8x96xf32> -> vector<8x96xf32>
    %c0_7 = arith.constant 0 : index
    %c0_8 = arith.constant 0 : index
    %7 = vector.load %arg4[%c0_7, %c0_8] : memref<1x96xf32, #tpu.memory_space<vmem>>, vector<1x96xf32>
    %8 = vector.broadcast %7 : vector<1x96xf32> to vector<8x96xf32>
    %9 = arith.addf %6, %8 : vector<8x96xf32>
    %10 = vector.extract_strided_slice %9 {offsets = [0, 0], sizes = [8, 8], strides = [1, 1]} : vector<8x96xf32> to vector<8x8xf32>
    %11 = arith.truncf %10 : vector<8x8xf32> to vector<8x8xbf16>
    %12 = vector.extract_strided_slice %9 {offsets = [0, 32], sizes = [8, 8], strides = [1, 1]} : vector<8x96xf32> to vector<8x8xf32>
    %13 = arith.truncf %12 : vector<8x8xf32> to vector<8x8xbf16>
    %14 = vector.extract_strided_slice %9 {offsets = [0, 64], sizes = [8, 8], strides = [1, 1]} : vector<8x96xf32> to vector<8x8xf32>
    %15 = arith.truncf %14 : vector<8x8xf32> to vector<8x8xbf16>
    %cst_9 = arith.constant dense<0.000000e+00> : vector<8x8xf32>
    %16 = tpu.matmul %11, %13, %cst_9 {dimension_numbers = #tpu.dot_dimension_numbers<[1], [1], [0], [0], [0, 0, 1, 0], [], []>} : vector<8x8xbf16>, vector<8x8xbf16>, vector<8x8xf32> -> vector<8x8xf32>
    %17 = vector.broadcast %3 : vector<1x8xf32> to vector<8x8xf32>
    %18 = arith.addf %16, %17 : vector<8x8xf32>
    %cst_10 = arith.constant dense<0xFF800000> : vector<8xf32>
    %19 = vector.multi_reduction <maximumf>, %18, %cst_10 [1] : vector<8x8xf32> to vector<8xf32>
    %20 = vector.shape_cast %19 : vector<8xf32> to vector<8x1xf32>
    %21 = vector.broadcast %20 : vector<8x1xf32> to vector<8x8xf32>
    %22 = arith.subf %18, %21 : vector<8x8xf32>
    %23 = math.exp %22 : vector<8x8xf32>
    %cst_11 = arith.constant dense<0.000000e+00> : vector<8xf32>
    %24 = vector.multi_reduction <add>, %23, %cst_11 [1] : vector<8x8xf32> to vector<8xf32>
    %25 = vector.shape_cast %24 : vector<8xf32> to vector<8x1xf32>
    %26 = tpu.reciprocal %25 {approx = true} : vector<8x1xf32> -> vector<8x1xf32>
    %27 = vector.broadcast %26 : vector<8x1xf32> to vector<8x8xf32>
    %28 = arith.mulf %23, %27 : vector<8x8xf32>
    %29 = arith.truncf %28 : vector<8x8xf32> to vector<8x8xbf16>
    %cst_12 = arith.constant dense<0.000000e+00> : vector<8x8xf32>
    %30 = tpu.matmul %29, %15, %cst_12 {dimension_numbers = #tpu.dot_dimension_numbers<[1], [0], [0], [1], [0, 0, 1, 1], [], []>} : vector<8x8xbf16>, vector<8x8xbf16>, vector<8x8xf32> -> vector<8x8xf32>
    %c0_13 = arith.constant 0 : index
    %c0_14 = arith.constant 0 : index
    %31 = vector.load %arg10[%c0_13, %c0_14] : memref<8x32xf32, #tpu.memory_space<vmem>>, vector<8x8xf32>
    tpu.vector_store %arg10[%c0_13, %c0_14], %30 {strides = array<i32>} : memref<8x32xf32, #tpu.memory_space<vmem>>, vector<8x8xf32>,
    %32 = vector.extract_strided_slice %9 {offsets = [0, 8], sizes = [8, 8], strides = [1, 1]} : vector<8x96xf32> to vector<8x8xf32>
    %33 = arith.truncf %32 : vector<8x8xf32> to vector<8x8xbf16>
    %34 = vector.extract_strided_slice %9 {offsets = [0, 40], sizes = [8, 8], strides = [1, 1]} : vector<8x96xf32> to vector<8x8xf32>
    %35 = arith.truncf %34 : vector<8x8xf32> to vector<8x8xbf16>
    %36 = vector.extract_strided_slice %9 {offsets = [0, 72], sizes = [8, 8], strides = [1, 1]} : vector<8x96xf32> to vector<8x8xf32>
    %37 = arith.truncf %36 : vector<8x8xf32> to vector<8x8xbf16>
    %cst_15 = arith.constant dense<0.000000e+00> : vector<8x8xf32>
    %38 = tpu.matmul %33, %35, %cst_15 {dimension_numbers = #tpu.dot_dimension_numbers<[1], [1], [0], [0], [0, 0, 1, 0], [], []>} : vector<8x8xbf16>, vector<8x8xbf16>, vector<8x8xf32> -> vector<8x8xf32>
    %39 = vector.broadcast %3 : vector<1x8xf32> to vector<8x8xf32>
    %40 = arith.addf %38, %39 : vector<8x8xf32>
    %cst_16 = arith.constant dense<0xFF800000> : vector<8xf32>
    %41 = vector.multi_reduction <maximumf>, %40, %cst_16 [1] : vector<8x8xf32> to vector<8xf32>
    %42 = vector.shape_cast %41 : vector<8xf32> to vector<8x1xf32>
    %43 = vector.broadcast %42 : vector<8x1xf32> to vector<8x8xf32>
    %44 = arith.subf %40, %43 : vector<8x8xf32>
    %45 = math.exp %44 : vector<8x8xf32>
    %cst_17 = arith.constant dense<0.000000e+00> : vector<8xf32>
    %46 = vector.multi_reduction <add>, %45, %cst_17 [1] : vector<8x8xf32> to vector<8xf32>
    %47 = vector.shape_cast %46 : vector<8xf32> to vector<8x1xf32>
    %48 = tpu.reciprocal %47 {approx = true} : vector<8x1xf32> -> vector<8x1xf32>
    %49 = vector.broadcast %48 : vector<8x1xf32> to vector<8x8xf32>
    %50 = arith.mulf %45, %49 : vector<8x8xf32>
    %51 = arith.truncf %50 : vector<8x8xf32> to vector<8x8xbf16>
    %cst_18 = arith.constant dense<0.000000e+00> : vector<8x8xf32>
    %52 = tpu.matmul %51, %37, %cst_18 {dimension_numbers = #tpu.dot_dimension_numbers<[1], [0], [0], [1], [0, 0, 1, 1], [], []>} : vector<8x8xbf16>, vector<8x8xbf16>, vector<8x8xf32> -> vector<8x8xf32>
    %c0_19 = arith.constant 0 : index
    %c8 = arith.constant 8 : index
    %53 = vector.load %arg10[%c0_19, %c8] : memref<8x32xf32, #tpu.memory_space<vmem>>, vector<8x8xf32>
    tpu.vector_store %arg10[%c0_19, %c8], %52 {strides = array<i32>} : memref<8x32xf32, #tpu.memory_space<vmem>>, vector<8x8xf32>,
    %54 = vector.extract_strided_slice %9 {offsets = [0, 16], sizes = [8, 8], strides = [1, 1]} : vector<8x96xf32> to vector<8x8xf32>
    %55 = arith.truncf %54 : vector<8x8xf32> to vector<8x8xbf16>
    %56 = vector.extract_strided_slice %9 {offsets = [0, 48], sizes = [8, 8], strides = [1, 1]} : vector<8x96xf32> to vector<8x8xf32>
    %57 = arith.truncf %56 : vector<8x8xf32> to vector<8x8xbf16>
    %58 = vector.extract_strided_slice %9 {offsets = [0, 80], sizes = [8, 8], strides = [1, 1]} : vector<8x96xf32> to vector<8x8xf32>
    %59 = arith.truncf %58 : vector<8x8xf32> to vector<8x8xbf16>
    %cst_20 = arith.constant dense<0.000000e+00> : vector<8x8xf32>
    %60 = tpu.matmul %55, %57, %cst_20 {dimension_numbers = #tpu.dot_dimension_numbers<[1], [1], [0], [0], [0, 0, 1, 0], [], []>} : vector<8x8xbf16>, vector<8x8xbf16>, vector<8x8xf32> -> vector<8x8xf32>
    %61 = vector.broadcast %3 : vector<1x8xf32> to vector<8x8xf32>
    %62 = arith.addf %60, %61 : vector<8x8xf32>
    %cst_21 = arith.constant dense<0xFF800000> : vector<8xf32>
    %63 = vector.multi_reduction <maximumf>, %62, %cst_21 [1] : vector<8x8xf32> to vector<8xf32>
    %64 = vector.shape_cast %63 : vector<8xf32> to vector<8x1xf32>
    %65 = vector.broadcast %64 : vector<8x1xf32> to vector<8x8xf32>
    %66 = arith.subf %62, %65 : vector<8x8xf32>
    %67 = math.exp %66 : vector<8x8xf32>
    %cst_22 = arith.constant dense<0.000000e+00> : vector<8xf32>
    %68 = vector.multi_reduction <add>, %67, %cst_22 [1] : vector<8x8xf32> to vector<8xf32>
    %69 = vector.shape_cast %68 : vector<8xf32> to vector<8x1xf32>
    %70 = tpu.reciprocal %69 {approx = true} : vector<8x1xf32> -> vector<8x1xf32>
    %71 = vector.broadcast %70 : vector<8x1xf32> to vector<8x8xf32>
    %72 = arith.mulf %67, %71 : vector<8x8xf32>
    %73 = arith.truncf %72 : vector<8x8xf32> to vector<8x8xbf16>
    %cst_23 = arith.constant dense<0.000000e+00> : vector<8x8xf32>
    %74 = tpu.matmul %73, %59, %cst_23 {dimension_numbers = #tpu.dot_dimension_numbers<[1], [0], [0], [1], [0, 0, 1, 1], [], []>} : vector<8x8xbf16>, vector<8x8xbf16>, vector<8x8xf32> -> vector<8x8xf32>
    %c0_24 = arith.constant 0 : index
    %c16 = arith.constant 16 : index
    %75 = vector.load %arg10[%c0_24, %c16] : memref<8x32xf32, #tpu.memory_space<vmem>>, vector<8x8xf32>
    tpu.vector_store %arg10[%c0_24, %c16], %74 {strides = array<i32>} : memref<8x32xf32, #tpu.memory_space<vmem>>, vector<8x8xf32>,
    %76 = vector.extract_strided_slice %9 {offsets = [0, 24], sizes = [8, 8], strides = [1, 1]} : vector<8x96xf32> to vector<8x8xf32>
    %77 = arith.truncf %76 : vector<8x8xf32> to vector<8x8xbf16>
    %78 = vector.extract_strided_slice %9 {offsets = [0, 56], sizes = [8, 8], strides = [1, 1]} : vector<8x96xf32> to vector<8x8xf32>
    %79 = arith.truncf %78 : vector<8x8xf32> to vector<8x8xbf16>
    %80 = vector.extract_strided_slice %9 {offsets = [0, 88], sizes = [8, 8], strides = [1, 1]} : vector<8x96xf32> to vector<8x8xf32>
    %81 = arith.truncf %80 : vector<8x8xf32> to vector<8x8xbf16>
    %cst_25 = arith.constant dense<0.000000e+00> : vector<8x8xf32>
    %82 = tpu.matmul %77, %79, %cst_25 {dimension_numbers = #tpu.dot_dimension_numbers<[1], [1], [0], [0], [0, 0, 1, 0], [], []>} : vector<8x8xbf16>, vector<8x8xbf16>, vector<8x8xf32> -> vector<8x8xf32>
    %83 = vector.broadcast %3 : vector<1x8xf32> to vector<8x8xf32>
    %84 = arith.addf %82, %83 : vector<8x8xf32>
    %cst_26 = arith.constant dense<0xFF800000> : vector<8xf32>
    %85 = vector.multi_reduction <maximumf>, %84, %cst_26 [1] : vector<8x8xf32> to vector<8xf32>
    %86 = vector.shape_cast %85 : vector<8xf32> to vector<8x1xf32>
    %87 = vector.broadcast %86 : vector<8x1xf32> to vector<8x8xf32>
    %88 = arith.subf %84, %87 : vector<8x8xf32>
    %89 = math.exp %88 : vector<8x8xf32>
    %cst_27 = arith.constant dense<0.000000e+00> : vector<8xf32>
    %90 = vector.multi_reduction <add>, %89, %cst_27 [1] : vector<8x8xf32> to vector<8xf32>
    %91 = vector.shape_cast %90 : vector<8xf32> to vector<8x1xf32>
    %92 = tpu.reciprocal %91 {approx = true} : vector<8x1xf32> -> vector<8x1xf32>
    %93 = vector.broadcast %92 : vector<8x1xf32> to vector<8x8xf32>
    %94 = arith.mulf %89, %93 : vector<8x8xf32>
    %95 = arith.truncf %94 : vector<8x8xf32> to vector<8x8xbf16>
    %cst_28 = arith.constant dense<0.000000e+00> : vector<8x8xf32>
    %96 = tpu.matmul %95, %81, %cst_28 {dimension_numbers = #tpu.dot_dimension_numbers<[1], [0], [0], [1], [0, 0, 1, 1], [], []>} : vector<8x8xbf16>, vector<8x8xbf16>, vector<8x8xf32> -> vector<8x8xf32>
    %c0_29 = arith.constant 0 : index
    %c24 = arith.constant 24 : index
    %97 = vector.load %arg10[%c0_29, %c24] : memref<8x32xf32, #tpu.memory_space<vmem>>, vector<8x8xf32>
    tpu.vector_store %arg10[%c0_29, %c24], %96 {strides = array<i32>} : memref<8x32xf32, #tpu.memory_space<vmem>>, vector<8x8xf32>,
    %c0_30 = arith.constant 0 : index
    %c0_31 = arith.constant 0 : index
    %98 = vector.load %arg10[%c0_30, %c0_31] : memref<8x32xf32, #tpu.memory_space<vmem>>, vector<8x32xf32>
    %99 = arith.truncf %98 : vector<8x32xf32> to vector<8x32xbf16>
    %c0_32 = arith.constant 0 : index
    %c0_33 = arith.constant 0 : index
    %100 = vector.load %arg5[%c0_32, %c0_33] : memref<32x32xbf16, #tpu.memory_space<vmem>>, vector<32x32xbf16>
    %cst_34 = arith.constant dense<0.000000e+00> : vector<8x32xf32>
    %101 = tpu.matmul %99, %100, %cst_34 {dimension_numbers = #tpu.dot_dimension_numbers<[1], [0], [0], [1], [0, 0, 1, 1], [], []>} : vector<8x32xbf16>, vector<32x32xbf16>, vector<8x32xf32> -> vector<8x32xf32>
    %c0_35 = arith.constant 0 : index
    %c0_36 = arith.constant 0 : index
    %102 = vector.load %arg6[%c0_35, %c0_36] : memref<1x32xf32, #tpu.memory_space<vmem>>, vector<1x32xf32>
    %103 = vector.broadcast %102 : vector<1x32xf32> to vector<8x32xf32>
    %104 = arith.addf %101, %103 : vector<8x32xf32>
    %105 = arith.addf %1, %104 : vector<8x32xf32>
    %cst_37 = arith.constant dense<0.000000e+00> : vector<8xf32>
    %106 = vector.multi_reduction <add>, %105, %cst_37 [1] : vector<8x32xf32> to vector<8xf32>
    %107 = vector.shape_cast %106 : vector<8xf32> to vector<8x1xf32>
    %cst_38 = arith.constant 3.200000e+01 : f32
    %108 = vector.broadcast %cst_38 : f32 to vector<8x1xf32>
    %109 = arith.divf %107, %108 : vector<8x1xf32>
    %110 = vector.broadcast %109 : vector<8x1xf32> to vector<8x32xf32>
    %111 = arith.subf %105, %110 : vector<8x32xf32>
    %112 = arith.mulf %111, %111 : vector<8x32xf32>
    %cst_39 = arith.constant dense<0.000000e+00> : vector<8xf32>
    %113 = vector.multi_reduction <add>, %112, %cst_39 [1] : vector<8x32xf32> to vector<8xf32>
    %114 = vector.shape_cast %113 : vector<8xf32> to vector<8x1xf32>
    %cst_40 = arith.constant 3.200000e+01 : f32
    %115 = vector.broadcast %cst_40 : f32 to vector<8x1xf32>
    %116 = arith.divf %114, %115 : vector<8x1xf32>
    %117 = vector.broadcast %109 : vector<8x1xf32> to vector<8x32xf32>
    %118 = arith.subf %105, %117 : vector<8x32xf32>
    %cst_41 = arith.constant 9.99999974E-6 : f32
    %119 = vector.broadcast %cst_41 : f32 to vector<8x1xf32>
    %120 = arith.addf %116, %119 : vector<8x1xf32>
    %121 = math.rsqrt %120 : vector<8x1xf32>
    %122 = vector.broadcast %121 : vector<8x1xf32> to vector<8x32xf32>
    %123 = arith.mulf %118, %122 : vector<8x32xf32>
    %c0_42 = arith.constant 0 : index
    %c0_43 = arith.constant 0 : index
    %124 = vector.load %arg7[%c0_42, %c0_43] : memref<1x32xf32, #tpu.memory_space<vmem>>, vector<1x32xf32>
    %125 = vector.broadcast %124 : vector<1x32xf32> to vector<8x32xf32>
    %126 = arith.mulf %123, %125 : vector<8x32xf32>
    %c0_44 = arith.constant 0 : index
    %c0_45 = arith.constant 0 : index
    %127 = vector.load %arg8[%c0_44, %c0_45] : memref<1x32xf32, #tpu.memory_space<vmem>>, vector<1x32xf32>
    %128 = vector.broadcast %127 : vector<1x32xf32> to vector<8x32xf32>
    %129 = arith.addf %126, %128 : vector<8x32xf32>
    %c0_46 = arith.constant 0 : index
    %c0_47 = arith.constant 0 : index
    %c0_48 = arith.constant 0 : index
    %130 = vector.load %arg9[%c0_46, %c0_47, %c0_48] : memref<1x8x32xf32, #tpu.memory_space<vmem>>, vector<1x8x32xf32>
    %131 = vector.shape_cast %130 : vector<1x8x32xf32> to vector<8x32xf32>
    %132 = vector.shape_cast %129 : vector<8x32xf32> to vector<1x8x32xf32>
    tpu.vector_store %arg9[%c0_46, %c0_47, %c0_48], %132 {strides = array<i32>} : memref<1x8x32xf32, #tpu.memory_space<vmem>>, vector<1x8x32xf32>,
    return
  }
  func.func @transform_0(%arg0: i32) -> (i32, i32, i32) {
    %c0_i32 = arith.constant 0 : i32
    %c0_i32_0 = arith.constant 0 : i32
    %c0_i32_1 = arith.constant 0 : i32
    return %arg0, %c0_i32, %c0_i32_0 : i32, i32, i32
  }
  func.func @transform_1(%arg0: i32) -> (i32, i32, i32) {
    %c0_i32 = arith.constant 0 : i32
    %c0_i32_0 = arith.constant 0 : i32
    %c0_i32_1 = arith.constant 0 : i32
    return %arg0, %c0_i32, %c0_i32_0 : i32, i32, i32
  }
  func.func @transform_2(%arg0: i32) -> (i32, i32) {
    %c0_i32 = arith.constant 0 : i32
    %c0_i32_0 = arith.constant 0 : i32
    %c0_i32_1 = arith.constant 0 : i32
    return %c0_i32, %c0_i32_0 : i32, i32
  }
  func.func @transform_3(%arg0: i32) -> (i32, i32) {
    %c0_i32 = arith.constant 0 : i32
    %c0_i32_0 = arith.constant 0 : i32
    %c0_i32_1 = arith.constant 0 : i32
    return %c0_i32, %c0_i32_0 : i32, i32
  }
  func.func @transform_4(%arg0: i32) -> (i32, i32) {
    %c0_i32 = arith.constant 0 : i32
    %c0_i32_0 = arith.constant 0 : i32
    %c0_i32_1 = arith.constant 0 : i32
    return %c0_i32, %c0_i32_0 : i32, i32
  }
  func.func @transform_5(%arg0: i32) -> (i32, i32) {
    %c0_i32 = arith.constant 0 : i32
    %c0_i32_0 = arith.constant 0 : i32
    %c0_i32_1 = arith.constant 0 : i32
    return %c0_i32, %c0_i32_0 : i32, i32
  }
  func.func @transform_6(%arg0: i32) -> (i32, i32) {
    %c0_i32 = arith.constant 0 : i32
    %c0_i32_0 = arith.constant 0 : i32
    %c0_i32_1 = arith.constant 0 : i32
    return %c0_i32, %c0_i32_0 : i32, i32
  }
  func.func @transform_7(%arg0: i32) -> (i32, i32) {
    %c0_i32 = arith.constant 0 : i32
    %c0_i32_0 = arith.constant 0 : i32
    %c0_i32_1 = arith.constant 0 : i32
    return %c0_i32, %c0_i32_0 : i32, i32
  }
  func.func @transform_8(%arg0: i32) -> (i32, i32, i32) {
    %c0_i32 = arith.constant 0 : i32
    %c0_i32_0 = arith.constant 0 : i32
    %c0_i32_1 = arith.constant 0 : i32
    return %arg0, %c0_i32, %c0_i32_0 : i32, i32, i32
  }
}

</mosaic_0001>

<bundles_post_ra>
// kernel: tpu_custom_call.1
= control target key start
LH: loop header
LB: loop body
LE: loop exit
PB: predicated region body
PF: predicated region fallthrough
CT: control target
= control target key end

     0   :  { %13 = vsyncpa [#allocation4], 0  ;;  %s1898_s0 = inlined_call_operand.hbm [shape: f32[2,8,32], index: 0, kind: input, shape index: {}]   ;;  %s1899_s1 = inlined_call_operand.vmem [shape: f32[2,1,8], index: 1, kind: input, shape index: {}]   ;;  %s1900_s2 = inlined_call_operand.hbm [shape: bf16[32,96], index: 2, kind: input, shape index: {}]   ;;  %s1901_s3 = inlined_call_operand.vmem [shape: f32[1,96], index: 3, kind: input, shape index: {}]   ;;  %s1902_s4 = inlined_call_operand.hbm [shape: bf16[32,32], index: 4, kind: input, shape index: {}]   ;;  %s1903_s5 = inlined_call_operand.vmem [shape: f32[1,32], index: 5, kind: input, shape index: {}]   ;;  %s1904_s6 = inlined_call_operand.vmem [shape: f32[1,32], index: 6, kind: input, shape index: {}]   ;;  %s1905_s7 = inlined_call_operand.vmem [shape: f32[1,32], index: 7, kind: input, shape index: {}]   ;;  %s1906_s8 = inlined_call_operand.hbm [shape: f32[2,8,32], index: 8, kind: output, shape index: {}]  }
   0x1   :  { %15 = vsyncpa [#allocation4 + $0x1], 0 }
   0x2   :  { %16 = vsyncpa [#allocation7], 0 }
   0x3   :  { %17 = vsyncpa [#allocation5], 0 }
   0x4   :  { %19 = vsyncpa [#allocation5 + $0x1], 0  ;;  %s1567_s27 = smov 0   ;;  %s1569_s28 = smov 0  }
   0x5   :  { %s1571_s29 = smov 0   ;;  %s1573_s30 = smov 0  }
   0x6 LB: > { %s1588_s9 = sadd.s32 4294967295, %s1498_s30   ;;  %s1114_s10 = sadd.s32 4294967294, %s1498_s30   ;;  %s1498_s30 = sphi %s1573_s30, %s1926_s30   ;;  %s1494_s29 = sphi %s1571_s29, %s1925_s29   ;;  %s1490_s28 = sphi %s1569_s28, %s1924_s28   ;;  %s1486_s27 = sphi %s1567_s27, %s1923_s27  }
   0x7   : > { %p45_p0 = scmp.ne.s32.totalorder %s1490_s28, %s1486_s27  ;;  %p1907_p1 = scmp.eq.s32.totalorder %s1588_s9, 0 }
   0x8   : > { %p227_p3 = scmp.eq.s32.totalorder %s1114_s10, 1  ;;  %p1115_p5 = scmp.ge.s32.totalorder %s1498_s30, 1 }
   0x9   : > { %p1597_p4 = por %p1907_p1, %p45_p0  ;;  %p234_p7 = scmp.lt.s32.totalorder %s1498_s30, 3 }
   0xa   : > { %p1602_p6 = por %p227_p3, %p45_p0  ;;  %s1500_s14 = smov [#allocation6]  }
   0xb   : > { %s1910_s11 = scalar_select %p1597_p4, 1, 0 }
   0xc   : > { %s1911_s12 = scalar_select %p1602_p6, 1, 0 }
   0xd   : > { %p1607_p8 = pnand %p1115_p5, %p234_p7  ;;  %s246_s15 = sshll.u32 %s1500_s14, 4  ;;  %s1611_s15 = int_to_ptr.vmem [resolvable:$true] %s246_s15 }
   0xe   : > { %s1501_s17 = smov [#allocation8]   ;;  %s1342_s21 = scalar_lea.hbm %s1900_s2, 256 }
   0xf   : > { %p1247_p9 = pneg %p1607_p8  ;;  %s262_s18 = sshll.u32 %s1501_s17, 4  ;;  %s1622_s18 = int_to_ptr.vmem [resolvable:$true] %s262_s18 }
  0x10   : > { %p1343_p12 = scmp.ne.s32.totalorder %s1900_s2, %s1342_s21  ;;  %p1349_p5 = scmp.lt.u32.totalorder %s1342_s21, %s1900_s2 }
  0x11   : > { %p1618_p11 = pnand %p1247_p9, %p1907_p1 }
  0x13   : > { %p1344_p13 = pneg %p1618_p11 }
  0x15   : > { %p1345_p0 = pnand %p1344_p13, %p1343_p12 }
  0x17   : > { %p1346_p3 = pneg %p1345_p0 }
  0x19   : > { %p1351_p7 = pnand %p1349_p5, %p1346_p3 }
  0x1b   : > { %1354 = shalt.err (!%p1351_p7)
}
  0x1c   : > { %s1355_s26 = scalar_lea.vmem %s1611_s15, 256  ;;  %p1363_p2 = scmp.lt.s32.totalorder %s1611_s15, %s1611_s15 }
  0x1d   : > { %p1356_p9 = scmp.ne.s32.totalorder %s1611_s15, %s1355_s26  ;;  %p1364_p12 = scmp.lt.s32.totalorder %s1355_s26, %s1355_s26 }
  0x1f   : > { %p1358_p10 = pnand %p1356_p9, %p1344_p13  ;;  %p1365_p0 = por %p1364_p12, %p1363_p2 }
  0x21   : > { %p1359_p1 = pneg %p1358_p10 }
  0x23   : > { %p1366_p6 = pnand %p1365_p0, %p1359_p1 }
  0x25   : > { %1369 = shalt.err (!%p1366_p6)
}
  0x26   : > { %s1502_s10 = smov 64   ;;  %s1503_s14 = smov 4  }
  0x27   : > { %1250 = dma.hbm_to_vmem [thread:$0]  (!%p1618_p11), %s1900_s2, 256, %s1611_s15, [#allocation7], %s1502_s10, %s1502_s10, %s1503_s14  }
  0x28   : > { %s1370_s22 = scalar_lea.hbm %s1902_s4, 256 }
  0x29   : > { %p1371_p2 = scmp.ne.s32.totalorder %s1902_s4, %s1370_s22  ;;  %p1377_p10 = scmp.lt.u32.totalorder %s1370_s22, %s1902_s4 }
  0x2b   : > { %p1373_p1 = pnand %p1371_p2, %p1344_p13 }
  0x2d   : > { %p1374_p6 = pneg %p1373_p1 }
  0x2f   : > { %p1379_p3 = pnand %p1377_p10, %p1374_p6 }
  0x31   : > { %1382 = shalt.err (!%p1379_p3)
}
  0x32   : > { %s1383_s15 = scalar_lea.vmem %s1622_s18, 256  ;;  %p1391_p12 = scmp.lt.s32.totalorder %s1622_s18, %s1622_s18 }
  0x33   : > { %p1384_p5 = scmp.ne.s32.totalorder %s1622_s18, %s1383_s15  ;;  %p1392_p0 = scmp.lt.s32.totalorder %s1383_s15, %s1383_s15 }
  0x35   : > { %p1386_p7 = pnand %p1384_p5, %p1344_p13  ;;  %p1393_p2 = por %p1392_p0, %p1391_p12 }
  0x37   : > { %p1387_p9 = pneg %p1386_p7 }
  0x39   : > { %p1394_p1 = pnand %p1393_p2, %p1387_p9 }
  0x3b   : > { %1397 = shalt.err (!%p1394_p1)
}
  0x3c   : > { %1253 = dma.hbm_to_vmem [thread:$0]  (!%p1618_p11), %s1902_s4, 256, %s1622_s18, [#allocation7], %s1502_s10, %s1502_s10, %s1503_s14  }
  0x3d   : > { %s1677_s20 = sadd.s32 1, %s1498_s30   ;;  %s32_s16 = sadd.s32 1, %s1494_s29 }
  0x3e   : > { %s29_s21 = ssub.s32 %s1498_s30, %s1677_s20  ;;  %p39_p13 = scmp.ne.s32.totalorder %s1494_s29, %s1490_s28 }
  0x3f   : > { %p30_p6 = scmp.eq.s32.totalorder %s29_s21, 0  ;;  %p40_p10 = scmp.eq.s32.totalorder %s1498_s30, 0 }
  0x40   : > { %p1914_p3 = scmp.eq.s32.totalorder %s1588_s9, 1  ;;  %p1264_p7 = scmp.lt.s32.totalorder %s1498_s30, 2 }
  0x41   : > { %s1693_s23 = scalar_select %p30_p6, %s1494_s29, %s32_s16  }
  0x42   : > { %p1687_p5 = por %p1914_p3, %p39_p13  ;;  %p41_p9 = por %p40_p10, %p39_p13 }
  0x43   : > { %s285_s24 = sand.u32 1, %s1494_s29   ;;  %s1120_s18 = sshll.u32 %s1498_s30, 7 }
  0x44   : > { %s1915_s22 = scalar_select %p1687_p5, 1, 0 }
  0x45   : > { %s1119_s25 = sshll.u32 %s285_s24, 3  ;;  %s1700_s26 = scalar_lea.hbm %s1898_s0, %s1120_s18 }
  0x46   : > { %s289_s15 = scalar_lea.vmem [#allocation3], %s1119_s25  ;;  %p1704_p11 = pnand %p1264_p7, %p41_p9 }
  0x47   : > { %s296_s17 = sshll.u32 %s289_s15, 4  ;;  %s286_s16 = scalar_lea.sflag [#allocation4], %s285_s24  ;;  %s1702_s17 = int_to_ptr.vmem [resolvable:$true] %s296_s17 }
  0x48   : > { %s1398_s21 = scalar_lea.hbm %s1700_s26, 128  ;;  %p1400_p0 = pneg %p1704_p11 }
  0x49   : > { %p1399_p12 = scmp.ne.s32.totalorder %s1700_s26, %s1398_s21  ;;  %s1403_s10 = scalar_lea.hbm %s1898_s0, 256 }
  0x4a   : > { %p1404_p13 = scmp.lt.u32.totalorder %s1700_s26, %s1898_s0  ;;  %p1405_p6 = scmp.lt.u32.totalorder %s1403_s10, %s1398_s21 }
  0x4b   : > { %p1401_p2 = pnand %p1400_p0, %p1399_p12  ;;  %p1407_p3 = scmp.lt.u32.totalorder %s1398_s21, %s1700_s26 }
  0x4c   : > { %p1406_p10 = por %p1405_p6, %p1404_p13 }
  0x4d   : > { %p1402_p1 = pneg %p1401_p2 }
  0x4e   : > { %p1408_p7 = por %p1407_p3, %p1406_p10 }
  0x50   : > { %p1409_p9 = pnand %p1408_p7, %p1402_p1 }
  0x52   : > { %1412 = shalt.err (!%p1409_p9)
}
  0x53   : > { %s1413_s24 = scalar_lea.vmem %s1702_s17, 128  ;;  %s1504_s18 = smov [#allocation3]  }
  0x54   : > { %p1414_p12 = scmp.ne.s32.totalorder %s1702_s17, %s1413_s24  ;;  %s1418_s25 = sshll.u32 %s1504_s18, 4  ;;  %s1419_s25 = int_to_ptr.vmem [resolvable:$false] %s1418_s25 }
  0x55   : > { %s1420_s14 = scalar_lea.vmem %s1419_s25, 256  ;;  %p1421_p4 = scmp.lt.s32.totalorder %s1702_s17, %s1419_s25 }
  0x56   : > { %p1416_p2 = pnand %p1414_p12, %p1400_p0  ;;  %p1422_p13 = scmp.lt.s32.totalorder %s1420_s14, %s1413_s24 }
  0x58   : > { %p1417_p5 = pneg %p1416_p2  ;;  %p1423_p6 = por %p1422_p13, %p1421_p4 }
  0x5a   : > { %p1424_p10 = pnand %p1423_p6, %p1417_p5 }
  0x5c   : > { %1427 = shalt.err (!%p1424_p10)
}
  0x5d   : > { %1257 = dma.hbm_to_vmem [thread:$0]  (!%p1704_p11), %s1700_s26, 128, %s1702_s17, %s286_s16  }
  0x5e   : > { %311 = sbr.rel (%p1607_p8) target bundleno = 1926 (0x786), region = 52  ;;  %s1736_s21 = sand.u32 (!%p1607_p8), 1, %s1490_s28  }
  0x5f   : > { %s1122_s10 = sshll.u32 (!%p1607_p8), %s1736_s21, 3  ;;  %s314_s15 = scalar_lea.sflag (!%p1607_p8), [#allocation4], %s1736_s21 }
  0x60   : > { %s317_s24 = scalar_lea.vmem (!%p1607_p8), [#allocation3], %s1122_s10  ;;  %p1917_p4 = scmp.ne.s32.totalorder (!%p1607_p8), %s1910_s11, 0 }
  0x65   : > { %1473 = dma.done.wait (%p1917_p4), %s314_s15, 128  }
  0x66   : > { %1475 = vsyncadd (%p1917_p4), %s314_s15, 4294967168  ;;  %p1918_p5 = scmp.eq.s32.totalorder %s1588_s9, 0 }
  0x68   : > { %1477 = dma.done.wait (%p1918_p5), [#allocation7], 512   ;;  %p1919_p8 = pmov %p1918_p5 }
  0x69   : > { %v1505_v0 = vmov 0.0   ;;  %vm1506_vm0 = vmmov 0   ;;  %v1320_v1 = vld [vmem:[#allocation6] sm:$0xff]   ;;  %v1321_v2 = vld [vmem:[#allocation6 + $0x8] sm:$0xff]   ;;  %v1756_v3 = vld [vmem:[%s317_s24] sm:$0xff]  ;;  %vm391_vm1 = vcmask 261120  }
  0x6a   : > { %1479 = vsyncadd (%p1919_p8), [#allocation7], 4294966784  ;;  %1171 = vmatprep.subr.bf16.mxu0 %v1505_v0  ;;  %1175 = vmatprep.mubr.msk.bf16.mxu0 %vm1506_vm0, %v1505_v0  ;;  %v367_v4 = vpack.c.bf16 %v1756_v3, %v1756_v3  ;;  %v1126_v5 = vld [vmem:[%s1901_s3] ss:$0 sm:$0xff]  ;;  %s1507_s26 = smov 120   ;;  %s1508_s17 = smov 96  }
  0x6b   : > { %1179 = vmatprep.subr.bf16.mxu1 %v1505_v0  ;;  %1181 = vmatprep.mubr.msk.bf16.mxu1 %vm1506_vm0, %v1505_v0  ;;  %s1509_s19 = smov 80   ;;  %s1510_s16 = smov 88   ;;  %vm445_vm2 = vcmask 64512   ;;  %vm509_vm3 = vcmask 1043456   ;;  %vm668_vm4 = vcmask 130112   ;;  %vm784_vm5 = vcmask 195712  }
  0x6c   : > { %1172 = vmatpush3.bf16.msra.mxu0 %v1320_v1  ;;  %s1511_s18 = smov 72   ;;  %s1512_s25 = smov 112   ;;  %vm900_vm6 = vcmask 261312  }
  0x6d   : > { %1173 = vmatprep.subr.bf16.mxu0 %v1505_v0  ;;  %s1513_s14 = smov 104   ;;  %p361_p11 = scmp.lt.s32.totalorder %s1588_s9, 1 }
  0x6e   : > { %s1003_s24 = scalar_lea.sflag [#allocation5], %s1736_s21  ;;  %p1920_p1 = scmp.ne.s32.totalorder %s1915_s22, 0 }
  0x6f   : > { %s362_s15 = scalar_select %p361_p11, %s1588_s9, 1 }
  0x70   : > { %1174 = vmatpush3.bf16.msra.mxu0 %v1321_v2 }
  0x71   : > { %1185 = vmatprep.subr.bf16.mxu0 %v1505_v0  ;;  %s363_s13 = scalar_lea.vmem %s1899_s1, %s362_s15 }
  0x72   : > { %v1130_v23 = vld [vmem:[%s363_s13] ss:$0 sm:$0xff] }
  0x73   : > { %1176 = vmatmul.mubr.msk.bf16.vlgmr.msra.gmra.mrb[0].mxu0 %vm391_vm1, %v367_v4 }
  0x74   : > { %1187 = vmatprep.mubr.msk.bf16.mxu0 %vm1506_vm0, %v1505_v0 }
 0x146   : > { %v429_v6 = vpop.f32.mrb[0].mxu0 }
 0x147   : > { %v430_v7 = vadd.f32 %v1126_v5, %v429_v6  ;;  %v1177_v8 = vpop.f32.mrb[1].mxu0 }
 0x148   : > { %v432_v9 = vpop.f32.mrb[2].mxu0 }
 0x149   : > { %v1768_v10 = vpack.c.bf16 %v430_v7, %v430_v7  ;;  %v1178_v11 = vpop.f32.mrb[3].mxu0 }
 0x14b   : > { %554 = vrot.lane.b32.xlu1 %v1768_v10, %s1507_s26  ;;  %443 = vrot.lane.b32.xlu0 %v1768_v10, %s1508_s17  ;;  %s1514_s26 = smov 56   ;;  %s1515_s17 = smov 64  }
 0x14f   : > { %672 = vrot.lane.b32.xlu1 %v1768_v10, %s1509_s19  ;;  %556 = vrot.lane.b32.xlu0 %v1768_v10, %s1510_s16  ;;  %s1516_s19 = smov 40   ;;  %s1517_s16 = smov 48  }
 0x153   : > { %788 = vrot.lane.b32.xlu1 %v1768_v10, %s1511_s18  ;;  %670 = vrot.lane.b32.xlu0 %v1768_v10, %s1512_s25  ;;  %s1518_s18 = smov 8   ;;  %s1519_s25 = smov 16  }
 0x157   : > { %786 = vrot.lane.b32.xlu0 %v1768_v10, %s1513_s14  ;;  %s1520_s14 = smov 24  }
 0x1bd   : > { %v444_v12 = vpop.permute.xlu0 %443  ;;  %v555_v15 = vpop.permute.xlu1 %554 }
 0x1be   : > { %v450_v13 = vsel %vm445_vm2, %v444_v12, 0 }
 0x1bf   : > { %1180 = vmatpush3.bf16.xpose.msra.mxu1 %v450_v13 }
 0x1c0   : > { %1191 = vmatprep.subr.bf16.mxu1 %v1505_v0 }
 0x1c1   : > { %v557_v14 = vpop.permute.xlu0 %556  ;;  %v673_v17 = vpop.permute.xlu1 %672 }
 0x1c2   : > { %v562_v16 = vsel %vm445_vm2, %v557_v14, 0  ;;  %v678_v18 = vsel %vm445_vm2, %v673_v17, 0 }
 0x1c5   : > { %v789_v19 = vpop.permute.xlu1 %788  ;;  %v671_v20 = vpop.permute.xlu0 %670 }
 0x1c6   : > { %1182 = vmatmul.mubr.msk.bf16.vlgmr.msra.gmra.mrb[0].mxu1 %vm445_vm2, %v1768_v10  ;;  %v794_v21 = vsel %vm445_vm2, %v789_v19, 0 }
 0x1c7   : > { %1192 = vmatpush3.bf16.xpose.msra.mxu1 %v562_v16  ;;  %1193 = vmatprep.mubr.msk.bf16.mxu1 %vm1506_vm0, %v1505_v0 }
 0x1c8   : > { %1203 = vmatprep.subr.bf16.mxu1 %v1505_v0 }
 0x1c9   : > { %v787_v22 = vpop.permute.xlu0 %786 }
 0x1ce   : > { %1194 = vmatmul.mubr.msk.bf16.vlgmr.msra.gmra.mrb[4].mxu1 %vm445_vm2, %v555_v15 }
 0x1cf   : > { %1204 = vmatpush3.bf16.xpose.msra.mxu1 %v678_v18  ;;  %1205 = vmatprep.mubr.msk.bf16.mxu1 %vm1506_vm0, %v1505_v0 }
 0x1d0   : > { %1215 = vmatprep.subr.bf16.mxu1 %v1505_v0 }
 0x1d6   : > { %1206 = vmatmul.mubr.msk.bf16.vlgmr.msra.gmra.mrb[8].mxu1 %vm445_vm2, %v671_v20 }
 0x1d7   : > { %1216 = vmatpush3.bf16.xpose.msra.mxu1 %v794_v21  ;;  %1217 = vmatprep.mubr.msk.bf16.mxu1 %vm1506_vm0, %v1505_v0 }
 0x1d8   : > { %1227 = vmatprep.subr.bf16.mxu1 %v1505_v0 }
 0x1de   : > { %1218 = vmatmul.mubr.msk.bf16.vlgmr.msra.gmra.mrb[12].mxu1 %vm445_vm2, %v787_v22 }
 0x1df   : > { %1231 = vmatprep.mubr.msk.bf16.mxu1 %vm1506_vm0, %v1505_v0 }
 0x299   : > { %v486_v24 = vpop.f32.mrb[0].mxu1 }
 0x29a   : > { %v487_v25 = vadd.f32 %v1130_v23, %v486_v24  ;;  %v1183_v26 = vpop.f32.mrb[1].mxu1 }
 0x29b   : > { %v489_v27 = vpop.f32.mrb[2].mxu1 }
 0x29c   : > { %v1184_v28 = vpop.f32.mrb[3].mxu1  ;;  %v492_v29 = vsel %vm445_vm2, %v487_v25, -inf }
 0x29d   : > { %493 = vmax.xlane.f32.xlu1 %v492_v29 }
 0x2a1   : > { %v598_v30 = vpop.f32.mrb[4].mxu1 }
 0x2a2   : > { %v599_v31 = vadd.f32 %v1130_v23, %v598_v30  ;;  %v1195_v32 = vpop.f32.mrb[5].mxu1 }
 0x2a3   : > { %v601_v33 = vpop.f32.mrb[6].mxu1 }
 0x2a4   : > { %v1196_v34 = vpop.f32.mrb[7].mxu1  ;;  %v604_v35 = vsel %vm445_vm2, %v599_v31, -inf }
 0x2a5   : > { %605 = vmax.xlane.f32.xlu0 %v604_v35 }
 0x2a9   : > { %v714_v36 = vpop.f32.mrb[8].mxu1 }
 0x2aa   : > { %v715_v37 = vadd.f32 %v1130_v23, %v714_v36  ;;  %v1207_v38 = vpop.f32.mrb[9].mxu1 }
 0x2ab   : > { %v717_v39 = vpop.f32.mrb[10].mxu1  ;;  %v1322_v38 = vld [vmem:[#allocation8] sm:$0xff]  }
 0x2ac   : > { %v1208_v40 = vpop.f32.mrb[11].mxu1  ;;  %v720_v41 = vsel %vm445_vm2, %v715_v37, -inf  ;;  %1228 = vmatpush3.bf16.msra.mxu1 %v1322_v38  ;;  %v1323_v39 = vld [vmem:[#allocation8 + $0x8] sm:$0xff]  }
 0x2ad   : > { %721 = vmax.xlane.f32.xlu0 %v720_v41  ;;  %1229 = vmatprep.subr.bf16.mxu1 %v1505_v0 }
 0x2b0   : > { %1230 = vmatpush3.bf16.msra.mxu1 %v1323_v39 }
 0x2b1   : > { %v830_v42 = vpop.f32.mrb[12].mxu1 }
 0x2b2   : > { %v831_v43 = vadd.f32 %v1130_v23, %v830_v42  ;;  %v1219_v44 = vpop.f32.mrb[13].mxu1 }
 0x2b3   : > { %v833_v45 = vpop.f32.mrb[14].mxu1 }
 0x2b4   : > { %v1220_v46 = vpop.f32.mrb[15].mxu1  ;;  %v836_v47 = vsel %vm445_vm2, %v831_v43, -inf }
 0x2b5   : > { %837 = vmax.xlane.f32.xlu1 %v836_v47 }
 0x32a   : > { %v494_v48 = vpop.xlane.xlu1 %493 }
 0x32b   : > { %v495_v49 = vsub.f32 %v487_v25, %v494_v48 }
 0x32d   : > { %v496_v50 = vmul.f32 1.442695, %v495_v49 }
 0x32f   : > { %1324 = vpow2.f32 %v496_v50 }
 0x332   : > { %v606_v51 = vpop.xlane.xlu0 %605 }
 0x333   : > { %v607_v52 = vsub.f32 %v599_v31, %v606_v51 }
 0x335   : > { %v608_v53 = vmul.f32 1.442695, %v607_v52  ;;  %v1139_v52 = vld [vmem:[%s1903_s5] ss:$0 sm:$0xff] }
 0x337   : > { %1326 = vpow2.f32 %v608_v53 }
 0x339   : > { %v1325_v54 = vpop.eup %1324 }
 0x33a   : > { %v722_v55 = vpop.xlane.xlu0 %721  ;;  %v498_v56 = vsel %vm445_vm2, %v1325_v54, 0.0 }
 0x33b   : > { %v723_v57 = vsub.f32 %v715_v37, %v722_v55  ;;  %499 = vadd.xlane.f32.xlu0 %v498_v56 }
 0x33d   : > { %v724_v58 = vmul.f32 1.442695, %v723_v57 }
 0x33f   : > { %1328 = vpow2.f32 %v724_v58 }
 0x341   : > { %v1327_v59 = vpop.eup %1326 }
 0x342   : > { %v610_v60 = vsel %vm445_vm2, %v1327_v59, 0.0  ;;  %v838_v63 = vpop.xlane.xlu1 %837 }
 0x343   : > { %611 = vadd.xlane.f32.xlu1 %v610_v60  ;;  %v839_v1 = vsub.f32 %v831_v43, %v838_v63 }
 0x345   : > { %v840_v2 = vmul.f32 1.442695, %v839_v1 }
 0x347   : > { %1330 = vpow2.f32 %v840_v2 }
 0x349   : > { %v1329_v61 = vpop.eup %1328 }
 0x34a   : > { %v726_v62 = vsel %vm445_vm2, %v1329_v61, 0.0 }
 0x34b   : > { %727 = vadd.xlane.f32.xlu0 %v726_v62 }
 0x351   : > { %v1331_v4 = vpop.eup %1330 }
 0x352   : > { %v842_v5 = vsel %vm445_vm2, %v1331_v4, 0.0 }
 0x354   : > { %616 = vrot.lane.b32.xlu1 %v1768_v10, %s1514_s26 }
 0x361   : > { %504 = vrot.lane.b32.xlu0 %v1768_v10, %s1515_s17 }
 0x365   : > { %848 = vrot.lane.b32.xlu0 %v1768_v10, %s1516_s19  ;;  %s1146_s19 = sshll.u32 %s1588_s9, 7  ;;  %s1521_s9 = smov [#allocation9]  }
 0x366   : > { %s1853_s15 = scalar_lea.hbm %s1906_s8, %s1146_s19 }
 0x378   : > { %843 = vadd.xlane.f32.xlu1 %v842_v5 }
 0x389   : > { %732 = vrot.lane.b32.xlu1 %v1768_v10, %s1517_s16  ;;  %s360_s16 = scalar_lea.vmem [#allocation9], %s1122_s10  ;;  %s1432_s10 = sshll.u32 %s1521_s9, 4  ;;  %s1433_s10 = int_to_ptr.vmem [resolvable:$false] %s1432_s10 }
 0x38a   : > { %s1434_s13 = scalar_lea.vmem %s1433_s10, 256 }
 0x3c8   : > { %v500_v6 = vpop.xlane.xlu0 %499 }
 0x3c9   : > { %1332 = vrcp.f32 %v500_v6 }
 0x3d0   : > { %v612_v7 = vpop.xlane.xlu1 %611 }
 0x3d1   : > { %1334 = vrcp.f32 %v612_v7 }
 0x3d3   : > { %v1333_v8 = vpop.eup %1332 }
 0x3d4   : > { %v502_v11 = vmul.f32 %v1333_v8, %v1325_v54  ;;  %v617_v14 = vpop.permute.xlu1 %616  ;;  %v1144_v8 = vld [vmem:[%s1905_s7] ss:$0 sm:$0xff] }
 0x3d5   : > { %v622_v17 = vsel %vm509_vm3, %v617_v14, 0 }
 0x3d6   : > { %v503_v15 = vpack.c.bf16 %v502_v11, %v502_v11 }
 0x3d8   : > { %v728_v9 = vpop.xlane.xlu0 %727 }
 0x3d9   : > { %1336 = vrcp.f32 %v728_v9 }
 0x3db   : > { %v1335_v16 = vpop.eup %1334 }
 0x3dc   : > { %v505_v12 = vpop.permute.xlu0 %504  ;;  %v614_v10 = vmul.f32 %v1335_v16, %v1327_v59 }
 0x3dd   : > { %v511_v13 = vsel %vm509_vm3, %v505_v12, 0 }
 0x3de   : > { %1186 = vmatpush3.bf16.msra.mxu0 %v511_v13  ;;  %v615_v18 = vpack.c.bf16 %v614_v10, %v614_v10 }
 0x3df   : > { %1197 = vmatprep.subr.bf16.mxu0 %v1505_v0 }
 0x3e0   : > { %v849_v24 = vpop.permute.xlu0 %848 }
 0x3e1   : > { %1188 = vmatmul.mubr.msk.bf16.vlgmr.msra.gmra.mrb[4].mxu0 %vm445_vm2, %v503_v15  ;;  %v854_v26 = vsel %vm509_vm3, %v849_v24, 0 }
 0x3e2   : > { %1198 = vmatpush3.bf16.msra.mxu0 %v622_v17  ;;  %1199 = vmatprep.mubr.msk.bf16.mxu0 %vm1506_vm0, %v1505_v0 }
 0x3e3   : > { %1209 = vmatprep.subr.bf16.mxu0 %v1505_v0  ;;  %v1337_v19 = vpop.eup %1336 }
 0x3e4   : > { %v730_v21 = vmul.f32 %v1337_v19, %v1329_v61 }
 0x3e6   : > { %v731_v25 = vpack.c.bf16 %v730_v21, %v730_v21 }
 0x3e9   : > { %1200 = vmatmul.mubr.msk.bf16.vlgmr.msra.gmra.mrb[8].mxu0 %vm445_vm2, %v615_v18 }
 0x3ea   : > { %1211 = vmatprep.mubr.msk.bf16.mxu0 %vm1506_vm0, %v1505_v0 }
 0x405   : > { %v844_v20 = vpop.xlane.xlu1 %843 }
 0x406   : > { %1338 = vrcp.f32 %v844_v20 }
 0x409   : > { %v733_v22 = vpop.permute.xlu1 %732 }
 0x40a   : > { %v738_v23 = vsel %vm509_vm3, %v733_v22, 0 }
 0x40b   : > { %1210 = vmatpush3.bf16.msra.mxu0 %v738_v23 }
 0x40c   : > { %1221 = vmatprep.subr.bf16.mxu0 %v1505_v0 }
 0x40e   : > { %1212 = vmatmul.mubr.msk.bf16.vlgmr.msra.gmra.mrb[12].mxu0 %vm445_vm2, %v731_v25 }
 0x40f   : > { %1222 = vmatpush3.bf16.msra.mxu0 %v854_v26  ;;  %1223 = vmatprep.mubr.msk.bf16.mxu0 %vm1506_vm0, %v1505_v0 }
 0x410   : > { %v1339_v27 = vpop.eup %1338 }
 0x411   : > { %v846_v28 = vmul.f32 %v1339_v27, %v1331_v4 }
 0x413   : > { %v847_v29 = vpack.c.bf16 %v846_v28, %v846_v28 }
 0x416   : > { %1224 = vmatmul.mubr.msk.bf16.vlgmr.msra.gmra.mrb[16].mxu0 %vm445_vm2, %v847_v29 }
 0x4b4   : > { %v547_v30 = vpop.f32.mrb[4].mxu0 }
 0x4b5   : > { %553 = vst.msk [vmem:[#allocation2] sm:$0xff] %vm445_vm2, %v547_v30  ;;  %v1189_v31 = vpop.f32.mrb[5].mxu0 }
 0x4b6   : > { %v550_v32 = vpop.f32.mrb[6].mxu0 }
 0x4b7   : > { %v1190_v33 = vpop.f32.mrb[7].mxu0 }
 0x4bc   : > { %v658_v34 = vpop.f32.mrb[8].mxu0 }
 0x4bd   : > { %665 = vrot.lane.b32.xlu1 %v658_v34, %s1518_s18  ;;  %v1201_v35 = vpop.f32.mrb[9].mxu0  ;;  %s1016_s18 = sshll.u32 %s360_s16, 4  ;;  %s1855_s18 = int_to_ptr.vmem [resolvable:$true] %s1016_s18 }
 0x4be   : > { %v661_v36 = vpop.f32.mrb[10].mxu0  ;;  %s1428_s11 = scalar_lea.vmem %s1855_s18, 128  ;;  %p1435_p9 = scmp.lt.s32.totalorder %s1855_s18, %s1433_s10 }
 0x4bf   : > { %v1202_v37 = vpop.f32.mrb[11].mxu0  ;;  %p1429_p0 = scmp.ne.s32.totalorder %s1855_s18, %s1428_s11  ;;  %p1436_p12 = scmp.lt.s32.totalorder %s1434_s13, %s1428_s11 }
 0x4c1   : > { %p1430_p3 = pnand %p1429_p0, %p1920_p1  ;;  %p1437_p2 = por %p1436_p12, %p1435_p9 }
 0x4c3   : > { %p1431_p7 = pneg %p1430_p3 }
 0x4c5   : > { %p1438_p13 = pnand %p1437_p2, %p1431_p7 }
 0x4e1   : > { %v774_v40 = vpop.f32.mrb[12].mxu0 }
 0x4e2   : > { %781 = vrot.lane.b32.xlu0 %v774_v40, %s1519_s25  ;;  %v1213_v41 = vpop.f32.mrb[13].mxu0 }
 0x4e3   : > { %v777_v42 = vpop.f32.mrb[14].mxu0 }
 0x4e4   : > { %v1214_v43 = vpop.f32.mrb[15].mxu0 }
 0x4e9   : > { %v890_v44 = vpop.f32.mrb[16].mxu0 }
 0x4ea   : > { %897 = vrot.lane.b32.xlu1 %v890_v44, %s1520_s14  ;;  %v1225_v45 = vpop.f32.mrb[17].mxu0 }
 0x4eb   : > { %v893_v46 = vpop.f32.mrb[18].mxu0 }
 0x4ec   : > { %v1226_v47 = vpop.f32.mrb[19].mxu0 }
 0x52f   : > { %v666_v48 = vpop.permute.xlu1 %665 }
 0x530   : > { %669 = vst.msk [vmem:[#allocation2] sm:$0xff] %vm668_vm4, %v666_v48 }
 0x554   : > { %v782_v49 = vpop.permute.xlu0 %781 }
 0x555   : > { %785 = vst.msk [vmem:[#allocation2] sm:$0xff] %vm784_vm5, %v782_v49 }
 0x55c   : > { %v898_v0 = vpop.permute.xlu1 %897 }
 0x55d   : > { %901 = vst.msk [vmem:[#allocation2] sm:$0xff] %vm900_vm6, %v898_v0 }
 0x564   : > { %v902_v50 = vld [vmem:[#allocation2] sm:$0xff] }
 0x565   : > { %v903_v51 = vpack.c.bf16 %v902_v50, %v902_v50 }
 0x567   : > { %1232 = vmatmul.mubr.msk.bf16.vlgmr.msra.gmra.mrb[16].mxu1 %vm391_vm1, %v903_v51 }
 0x63a   : > { %v964_v53 = vpop.f32.mrb[16].mxu1 }
 0x63b   : > { %v965_v54 = vadd.f32 %v1139_v52, %v964_v53  ;;  %v1233_v55 = vpop.f32.mrb[17].mxu1 }
 0x63c   : > { %v967_v56 = vpop.f32.mrb[18].mxu1 }
 0x63d   : > { %v1234_v57 = vpop.f32.mrb[19].mxu1  ;;  %v970_v58 = vadd.f32 %v965_v54, %v1756_v3  ;;  %v1143_v3 = vld [vmem:[%s1904_s6] ss:$0 sm:$0xff] }
 0x63f   : > { %v971_v59 = vsel %vm391_vm1, %v970_v58, 0.0 }
 0x640   : > { %972 = vadd.xlane.f32.xlu0 %v971_v59 }
 0x6cd   : > { %v973_v60 = vpop.xlane.xlu0 %972 }
 0x6ce   : > { %v975_v61 = vmul.f32 0.03125, %v973_v60 }
 0x6d0   : > { %v976_v62 = vsub.f32 %v970_v58, %v975_v61 }
 0x6d2   : > { %v977_v63 = vmul.f32 %v976_v62, %v976_v62 }
 0x6d4   : > { %v978_v1 = vsel %vm391_vm1, %v977_v63, 0.0 }
 0x6d5   : > { %979 = vadd.xlane.f32.xlu1 %v978_v1 }
 0x762   : > { %v980_v2 = vpop.xlane.xlu1 %979 }
 0x763   : > { %v981_v4 = vmul.f32 0.03125, %v980_v2 }
 0x765   : > { %v982_v5 = vadd.f32 1e-05, %v981_v4 }
 0x767   : > { %1340 = vrsqrt.f32 %v982_v5 }
 0x771   : > { %v1341_v6 = vpop.eup %1340 }
 0x772   : > { %v984_v7 = vmul.f32 %v1341_v6, %v976_v62 }
 0x774   : > { %v992_v9 = vmul.f32 %v1143_v3, %v984_v7 }
 0x776   : > { %v1000_v11 = vadd.f32 %v1144_v8, %v992_v9 }
 0x778   : > { %1001 = vst.msk [vmem:[%s360_s16] sm:$0xff] %vm391_vm1, %v1000_v11 }
 0x779   : > { %1441 = shalt.err (!%p1438_p13)
}
 0x77a   : > { %s1442_s21 = scalar_lea.hbm %s1853_s15, 128  ;;  %s1446_s19 = scalar_lea.hbm %s1906_s8, 256 }
 0x77b   : > { %p1443_p6 = scmp.ne.s32.totalorder %s1853_s15, %s1442_s21  ;;  %p1447_p5 = scmp.lt.u32.totalorder %s1853_s15, %s1906_s8 }
 0x77c   : > { %p1448_p8 = scmp.lt.u32.totalorder %s1446_s19, %s1442_s21  ;;  %p1450_p0 = scmp.lt.u32.totalorder %s1442_s21, %s1853_s15 }
 0x77d   : > { %p1444_p10 = pnand %p1443_p6, %p1920_p1 }
 0x77e   : > { %p1449_p11 = por %p1448_p8, %p1447_p5 }
 0x77f   : > { %p1445_p4 = pneg %p1444_p10 }
 0x780   : > { %p1451_p3 = por %p1450_p0, %p1449_p11 }
 0x782   : > { %p1452_p7 = pnand %p1451_p3, %p1445_p4 }
 0x784   : > { %1455 = shalt.err (!%p1452_p7)
}
 0x785   : > { %1245 = dma.vmem_to_hbm [thread:$0]  (%p1920_p1), %s1855_s18, 128, %s1853_s15, %s1003_s24  }
 0x786 PF: > { %s1028_s14 = sand.u32 1, %s1486_s27   ;;  %p1921_p9 = scmp.ne.s32.totalorder %s1911_s12, 0 }
 0x787   : > { %p1922_p12 = scmp.ge.s32.totalorder %s1498_s30, 2  ;;  %s1029_s11 = scalar_lea.sflag [#allocation5], %s1028_s14 }
 0x789   : > { %p1259_p2 = pnand %p1922_p12, %p1921_p9 }
 0x78b   : > { %1481 = dma.done.wait (!%p1259_p2), %s1029_s11, 128  }
 0x78c   : > { %1483 = vsyncadd (!%p1259_p2), %s1029_s11, 4294967168  ;;  %p22_p13 = scmp.ge.s32.totalorder %s1677_s20, 4   ;;  %s1923_s27 = smov %s1490_s28 }
 0x78d   : > { %s1924_s28 = smov %s1494_s29  ;;  %s1925_s29 = smov %s1693_s23 }
 0x78e   : > { %s1926_s30 = smov %s1677_s20  ;;  %24 = sbr.rel (!%p22_p13) target bundleno = 6 (0x6), region = 108 }
 0x795   :  { %1034 = vsyncpa [#allocation4], 1 }
 0x796   :  { %1036 = vsyncpa [#allocation4 + $0x1], 1 }
 0x797   :  { %1037 = vsyncpa [#allocation7], 1 }
 0x798   :  { %1038 = vsyncpa [#allocation5], 1 }
 0x799   :  { %1040 = vsyncpa [#allocation5 + $0x1], 1 }

</bundles_post_ra>
